<compile_context>
chip_gen: v7x
topology: tpu7x:2x2x1
jax: 0.10.0
libtpu: 0.0.40
codegen_flags: <defaults>
</compile_context>

<pallas_src>
import jax
import jax.numpy as jnp
from jax import lax
from jax.experimental import pallas as pl
from jax.experimental.pallas import tpu as pltpu

# ----------------------------- model config ---------------------------------
N_LAYERS = 2          # transformer.resblocks
N_HEADS = 4
CTX = 8               # L : context length (sequence)
WIDTH = 32            # D : transformer width
HEAD_DIM = WIDTH // N_HEADS
FF = 4 * WIDTH        # MLP hidden dim
PROJ = 32             # text_projection output dim
PROJ_PAD = 128        # lane-dense output width (unmasked 128-lane stores); sliced to PROJ outside
EPS = 1e-5
B_TILE = 16           # sequences per grid step -> M = B_TILE*CTX = 128 MXU rows.
                      # keep padded batch >= 2*B_TILE on v7x (2 TCs, "parallel" grid);
                      # raise B_TILE on single-TC v5e/v6e to amortize per-step overhead.
M_TILE = B_TILE * CTX


def _layer_norm(x, g, b):
    mu = jnp.mean(x, axis=-1, keepdims=True)
    xc = x - mu
    var = jnp.mean(xc * xc, axis=-1, keepdims=True)
    return xc * lax.rsqrt(var + EPS) * g + b


# =========================== Kernel 1: prompt assembly ========================
def _prompt_assemble_kernel(prefix_ref, ctx_ref, suffix_ref, out_ref):
    # class_token_position == 'end': prompts = cat([prefix, ctx, suffix], dim=1)
    # TODO(synk): 'middle'/'front' positions need ragged per-task name_len splits of the
    # suffix; not expressible with a static layout here.
    n = out_ref.shape[0]
    n_ctx, d = ctx_ref.shape
    out_ref[:, 0:1, :] = prefix_ref[...]
    out_ref[:, 1:1 + n_ctx, :] = jnp.broadcast_to(ctx_ref[...][None], (n, n_ctx, d))
    out_ref[:, 1 + n_ctx:, :] = suffix_ref[...]


def task_prompt_learner_forward(prefix, ctx, suffix):
    """TaskPromptLearner.forward (class_token_position='end', generic ctx)."""
    n, _, d = prefix.shape
    l = 1 + ctx.shape[0] + suffix.shape[1]
    return pl.pallas_call(
        _prompt_assemble_kernel,
        grid=(1,),
        in_specs=[pl.BlockSpec(prefix.shape, lambda i: (0, 0, 0)),
                  pl.BlockSpec(ctx.shape, lambda i: (0, 0)),
                  pl.BlockSpec(suffix.shape, lambda i: (0, 0, 0))],
        out_specs=pl.BlockSpec((n, l, d), lambda i: (0, 0, 0)),
        out_shape=jax.ShapeDtypeStruct((n, l, d), prefix.dtype),
    )(prefix, ctx, suffix)


# ================= Kernel 2: fused prompt assembly + text encoder =================
def _fused_prompt_text_encoder_kernel(
        eot_ref,                          # (N_pad,) int32, SMEM scalar prefetch: EOT positions
        prefix_ref, ctx_ref, suffix_ref,  # (Bt,1,D), (n_ctx,D), (Bt,L-1-n_ctx,D)
        pos_ref,                          # (L, D)  positional embedding
        bias_ref,                         # (M, M)  block-diagonal causal additive bias (0 / -1e9)
        ln1_g_ref, ln1_b_ref,             # (LY, 1, D)
        w_qkv_ref, b_qkv_ref,             # (LY, D, 3D) bf16 , (LY, 1, 3D) f32
        w_out_ref, b_out_ref,             # (LY, D, D)  bf16 , (LY, 1, D)
        ln2_g_ref, ln2_b_ref,             # (LY, 1, D)
        w_fc_ref, b_fc_ref,               # (LY, D, FF) bf16 , (LY, 1, FF)
        w_pr_ref, b_pr_ref,               # (LY, FF, D) bf16 , (LY, 1, D)
        lnf_g_ref, lnf_b_ref,             # (1, D)
        tproj_ref,                        # (D, PROJ_PAD) bf16 (zero-padded past PROJ)
        out_ref,                          # (Bt, PROJ_PAD) f32
        asm_ref,                          # VMEM scratch (Bt, L, D) f32 : assembled prompts
        attn_ref):                        # VMEM scratch (M, D) f32    : merged head outputs
    B, L, D, H, Dh = B_TILE, CTX, WIDTH, N_HEADS, HEAD_DIM
    M = B * L
    n_ctx = ctx_ref.shape[0]
    scale = Dh ** -0.5
    bf = jnp.bfloat16

    # ---- fused TaskPromptLearner.forward (class_token_position == 'end') ----
    asm_ref[:, 0:1, :] = prefix_ref[...]
    asm_ref[:, 1:1 + n_ctx, :] = jnp.broadcast_to(ctx_ref[...][None], (B, n_ctx, D))
    asm_ref[:, 1 + n_ctx:, :] = suffix_ref[...]

    # fold the batch tile into the sublane (M) dim for every GEMM
    x = (asm_ref[...] + pos_ref[...][None, :, :]).reshape(M, D)     # (M, D) f32
    bias = bias_ref[...]                                            # (M, M) f32

    # TODO(synk): at real CLIP sizes (WIDTH>=512, 12 layers) stream per-layer weights
    # (layer grid axis / emit_pipeline, explicit vmem_limit_bytes) and single-buffer the
    # grid-invariant operands (pipeline_mode=pl.Buffered(1)) instead of keeping the full
    # stack double-buffered in VMEM; negligible at WIDTH=32, decisive on v7x (64 MiB).
    for l in range(N_LAYERS):
        # ---------------- multi-head self-attention (pre-LN), fused QKV GEMM ----------------
        h_ln = _layer_norm(x, ln1_g_ref[l], ln1_b_ref[l])
        qkv = jnp.dot(h_ln.astype(bf), w_qkv_ref[l],
                      preferred_element_type=jnp.float32) + b_qkv_ref[l]        # (M, 3D)

        # per-head attention over the folded M = B*L rows with a block-diagonal causal
        # bias (cross-sequence entries masked): 4 well-shaped matmuls, 128-lane softmax rows.
        for hi in range(H):
            q_h = qkv[:, hi * Dh:(hi + 1) * Dh] * scale                          # (M, Dh)
            k_h = qkv[:, D + hi * Dh:D + (hi + 1) * Dh]                          # (M, Dh)
            v_h = qkv[:, 2 * D + hi * Dh:2 * D + (hi + 1) * Dh]                  # (M, Dh)
            s = lax.dot_general(q_h.astype(bf), k_h.astype(bf),
                                (((1,), (1,)), ((), ())),
                                preferred_element_type=jnp.float32) + bias       # (M, M)
            mx = jnp.max(s, axis=-1, keepdims=True)
            p = jnp.exp(s - mx)
            p = p * pl.reciprocal(jnp.sum(p, axis=-1, keepdims=True), approx=True)
            attn_ref[:, hi * Dh:(hi + 1) * Dh] = jnp.dot(
                p.astype(bf), v_h.astype(bf), preferred_element_type=jnp.float32)

        # single fused output projection (M, D) x (D, D)
        x = x + jnp.dot(attn_ref[...].astype(bf), w_out_ref[l],
                        preferred_element_type=jnp.float32) + b_out_ref[l]

        # ------------------------------ MLP with QuickGELU ------------------------------
        h2 = _layer_norm(x, ln2_g_ref[l], ln2_b_ref[l])
        y = jnp.dot(h2.astype(bf), w_fc_ref[l],
                    preferred_element_type=jnp.float32) + b_fc_ref[l]
        y = y * jax.nn.sigmoid(1.702 * y)          # kept in f32 (v5e VPU/EUP have no bf16)
        y = jnp.dot(y.astype(bf), w_pr_ref[l],
                    preferred_element_type=jnp.float32) + b_pr_ref[l]
        x = x + y

    # ------- EOT row gather (before ln_final), ln_final, text_projection -------
    x3 = x.reshape(B, L, D)
    b_iota = lax.broadcasted_iota(jnp.int32, (B, L), 0)
    l_iota = lax.broadcasted_iota(jnp.int32, (B, L), 1)
    base = pl.program_id(0) * B
    sel = jnp.zeros((B, L), jnp.float32)
    for j in range(B):                    # EOT positions come off the scalar path (SMEM)
        e = eot_ref[base + j]
        sel = jnp.where(jnp.logical_and(b_iota == j, l_iota == e), 1.0, sel)
    rows = jnp.sum(x3 * sel[:, :, None], axis=1)                                 # (B, D)
    rows = _layer_norm(rows, lnf_g_ref[...], lnf_b_ref[...])
    # lane-dense, unmasked store of the whole (B, PROJ_PAD=128) output block
    out_ref[...] = jnp.dot(rows.astype(bf), tproj_ref[...],
                           preferred_element_type=jnp.float32)


def _prepare_kernel_params(p):
    """bf16 GEMM operands (original layouts kept) + lane-dense padded text projection."""
    bf = lambda a: a.astype(jnp.bfloat16)
    tproj_pad = jnp.zeros((WIDTH, PROJ_PAD), jnp.float32).at[:, :PROJ].set(p['tproj'])
    return dict(
        pos=p['pos'],
        ln1_g=p['ln1_g'], ln1_b=p['ln1_b'],
        w_qkv=bf(p['w_qkv']), b_qkv=p['b_qkv'],
        w_out=bf(p['w_out']), b_out=p['b_out'],
        ln2_g=p['ln2_g'], ln2_b=p['ln2_b'],
        w_fc=bf(p['w_fc']), b_fc=p['b_fc'],
        w_pr=bf(p['w_pr']), b_pr=p['b_pr'],
        lnf_g=p['lnf_g'], lnf_b=p['lnf_b'],
        tproj=bf(tproj_pad),
    )


def _block_diag_causal_bias():
    """Additive bias over the folded (B_TILE*CTX) rows: causal within a sequence,
    -1e9 across sequences.  Finite -1e9 is safe because the diagonal is never masked."""
    m = jnp.arange(M_TILE)
    bi = m // CTX
    li = m % CTX
    allow = (bi[:, None] == bi[None, :]) & (li[None, :] <= li[:, None])
    return jnp.where(allow, 0.0, -1e9).astype(jnp.float32)


def fused_prompt_text_encoder_forward(prefix, ctx, suffix, tokenized_prompts, params):
    """TaskPromptLearner assembly fused with the CLIP text tower (no prompt HBM round trip)."""
    N, _, D = prefix.shape
    n_ctx = ctx.shape[0]
    suf_len = suffix.shape[1]
    assert D == WIDTH and 1 + n_ctx + suf_len == CTX
    kp = _prepare_kernel_params(params)

    # EOT position per sequence (argmax of token ids) -> scalar-prefetch (SMEM) vector
    eot = jnp.argmax(tokenized_prompts, axis=-1).astype(jnp.int32)      # (N,)
    attn_bias = _block_diag_causal_bias()

    # pad batch up to a multiple of B_TILE
    n_pad = pl.cdiv(N, B_TILE) * B_TILE
    if n_pad != N:
        pad = n_pad - N
        prefix = jnp.pad(prefix, ((0, pad), (0, 0), (0, 0)))
        suffix = jnp.pad(suffix, ((0, pad), (0, 0), (0, 0)))
        eot = jnp.pad(eot, (0, pad))

    def fs(shape):   # grid-invariant (constant block index) full-array spec
        nd = len(shape)
        return pl.BlockSpec(shape, lambda i, *_, nd=nd: (0,) * nd)

    in_specs = [
        pl.BlockSpec((B_TILE, 1, D), lambda i, *_: (i, 0, 0)),          # prefix (batch tile)
        fs(ctx.shape),                                                  # shared generic ctx
        pl.BlockSpec((B_TILE, suf_len, D), lambda i, *_: (i, 0, 0)),    # suffix (batch tile)
        fs(kp['pos'].shape),
        fs(attn_bias.shape),
        fs(kp['ln1_g'].shape), fs(kp['ln1_b'].shape),
        fs(kp['w_qkv'].shape), fs(kp['b_qkv'].shape),
        fs(kp['w_out'].shape), fs(kp['b_out'].shape),
        fs(kp['ln2_g'].shape), fs(kp['ln2_b'].shape),
        fs(kp['w_fc'].shape), fs(kp['b_fc'].shape),
        fs(kp['w_pr'].shape), fs(kp['b_pr'].shape),
        fs(kp['lnf_g'].shape), fs(kp['lnf_b'].shape),
        fs(kp['tproj'].shape),
    ]
    out = pl.pallas_call(
        _fused_prompt_text_encoder_kernel,
        grid_spec=pltpu.PrefetchScalarGridSpec(
            num_scalar_prefetch=1,
            grid=(n_pad // B_TILE,),
            in_specs=in_specs,
            out_specs=pl.BlockSpec((B_TILE, PROJ_PAD), lambda i, *_: (i, 0)),
            scratch_shapes=[pltpu.VMEM((B_TILE, CTX, WIDTH), jnp.float32),
                            pltpu.VMEM((M_TILE, WIDTH), jnp.float32)]),
        out_shape=jax.ShapeDtypeStruct((n_pad, PROJ_PAD), jnp.float32),
        compiler_params=pltpu.CompilerParams(dimension_semantics=("parallel",)),
    )(eot, prefix, ctx, suffix, kp['pos'], attn_bias,
      kp['ln1_g'], kp['ln1_b'], kp['w_qkv'], kp['b_qkv'],
      kp['w_out'], kp['b_out'], kp['ln2_g'], kp['ln2_b'],
      kp['w_fc'], kp['b_fc'], kp['w_pr'], kp['b_pr'],
      kp['lnf_g'], kp['lnf_b'], kp['tproj'])
    return out[:N, :PROJ]


# --------------------- deterministic synthetic weights -----------------------
def init_params(key):
    ks = jax.random.split(key, 16)
    LY, D, F, P, L = N_LAYERS, WIDTH, FF, PROJ, CTX
    nrm = lambda k, s, sc: jax.random.normal(k, s, jnp.float32) * sc
    return dict(
        pos=nrm(ks[0], (L, D), 0.01),
        ln1_g=1.0 + nrm(ks[1], (LY, 1, D), 0.01),
        ln1_b=nrm(ks[2], (LY, 1, D), 0.01),
        w_qkv=nrm(ks[3], (LY, D, 3 * D), D ** -0.5),
        b_qkv=nrm(ks[4], (LY, 1, 3 * D), 0.01),
        w_out=nrm(ks[5], (LY, D, D), D ** -0.5),
        b_out=nrm(ks[6], (LY, 1, D), 0.01),
        ln2_g=1.0 + nrm(ks[7], (LY, 1, D), 0.01),
        ln2_b=nrm(ks[8], (LY, 1, D), 0.01),
        w_fc=nrm(ks[9], (LY, D, F), D ** -0.5),
        b_fc=nrm(ks[10], (LY, 1, F), 0.01),
        w_pr=nrm(ks[11], (LY, F, D), F ** -0.5),
        b_pr=nrm(ks[12], (LY, 1, D), 0.01),
        lnf_g=1.0 + nrm(ks[13], (1, D), 0.01),
        lnf_b=nrm(ks[14], (1, D), 0.01),
        tproj=nrm(ks[15], (D, P), D ** -0.5),
    )


# ------------------------- pure-JAX references --------------------------------
def reference_prompts(prefix, ctx, suffix):
    n = prefix.shape[0]
    ctx_e = jnp.broadcast_to(ctx[None], (n,) + ctx.shape)
    return jnp.concatenate([prefix, ctx_e, suffix], axis=1)


def reference_forward(prompts, tokenized, p):
    x = prompts + p['pos']
    N, L, D = x.shape
    causal = jnp.tril(jnp.ones((L, L), bool))

    def ln(x, g, b):
        mu = x.mean(-1, keepdims=True)
        xc = x - mu
        var = (xc * xc).mean(-1, keepdims=True)
        return xc * lax.rsqrt(var + EPS) * g + b

    for l in range(N_LAYERS):
        h = ln(x, p['ln1_g'][l], p['ln1_b'][l])
        qkv = h @ p['w_qkv'][l] + p['b_qkv'][l]
        q, k, v = jnp.split(qkv, 3, axis=-1)
        q = q.reshape(N, L, N_HEADS, HEAD_DIM)
        k = k.reshape(N, L, N_HEADS, HEAD_DIM)
        v = v.reshape(N, L, N_HEADS, HEAD_DIM)
        s = jnp.einsum('nlhd,nmhd->nhlm', q, k) / (HEAD_DIM ** 0.5)
        s = jnp.where(causal[None, None], s, -jnp.inf)
        a = jax.nn.softmax(s, axis=-1)
        o = jnp.einsum('nhlm,nmhd->nlhd', a, v).reshape(N, L, D)
        x = x + o @ p['w_out'][l] + p['b_out'][l]
        h2 = ln(x, p['ln2_g'][l], p['ln2_b'][l])
        y = h2 @ p['w_fc'][l] + p['b_fc'][l]
        y = y * jax.nn.sigmoid(1.702 * y)
        x = x + y @ p['w_pr'][l] + p['b_pr'][l]
    xf = ln(x, p['lnf_g'], p['lnf_b'])
    eot = jnp.argmax(tokenized, axis=-1)
    rows = xf[jnp.arange(N), eot]
    return rows @ p['tproj']


# --------------------------------- main ---------------------------------------
if __name__ == "__main__":
    key = jax.random.PRNGKey(0)
    kparam, kctx, kpre, ksuf, ktok = jax.random.split(key, 5)
    params = init_params(kparam)

    n_task = 20           # number of tasks (batch); padded to a B_TILE multiple internally
    n_ctx = 4             # learned context tokens
    L, D = CTX, WIDTH

    # TaskPromptLearner buffers (synthetic CLIP token embeddings)
    prefix = jax.random.normal(kpre, (n_task, 1, D), jnp.float32) * 0.1               # SOS emb
    ctx_vec = jax.random.normal(kctx, (n_ctx, D), jnp.float32) * 0.02                 # learned ctx
    suffix = jax.random.normal(ksuf, (n_task, L - 1 - n_ctx, D), jnp.float32) * 0.1   # name/EOT emb

    # synthetic tokenized prompts; EOT token (largest id) lives in the suffix region
    tok = jax.random.randint(ktok, (n_task, L), 1, 400, dtype=jnp.int32)
    eot_pos = 1 + n_ctx + jax.random.randint(jax.random.PRNGKey(1), (n_task,),
                                             0, L - 1 - n_ctx, dtype=jnp.int32)
    tok = tok.at[jnp.arange(n_task), eot_pos].set(49407)

    # Kernel 1: TaskPromptLearner.forward (module output)
    prompts = jax.block_until_ready(task_prompt_learner_forward(prefix, ctx_vec, suffix))
    # Kernel 2: prompt assembly fused with the downstream CLIP text encoder
    feats = jax.block_until_ready(
        fused_prompt_text_encoder_forward(prefix, ctx_vec, suffix, tok, params))

    prompts_ref = reference_prompts(prefix, ctx_vec, suffix)
    feats_ref = reference_forward(prompts_ref, tok, params)

    assert prompts.shape == (n_task, L, D)
    assert feats.shape == (n_task, PROJ)
    assert jnp.allclose(prompts, prompts_ref, rtol=1e-6, atol=1e-6)
    # kernel uses bf16 MXU operands for the GEMMs; reference is pure f32
    assert jnp.allclose(feats, feats_ref, rtol=5e-2, atol=5e-2)
    print("KERNEL_OK")
</pallas_src>

<mosaic_0001>
module attributes {stable_mosaic.version = 11 : i64} {
  func.func @_prompt_assemble_kernel(%arg0: i32, %arg1: memref<20x1x32xf32, #tpu.memory_space<vmem>>, %arg2: memref<4x32xf32, #tpu.memory_space<vmem>>, %arg3: memref<20x3x32xf32, #tpu.memory_space<vmem>>, %arg4: memref<20x8x32xf32, #tpu.memory_space<vmem>>) attributes {dimension_semantics = [#tpu.dimension_semantics<arbitrary>], iteration_bounds = array<i64: 1>, scalar_prefetch = 0 : i64, scratch_operands = 0 : i64, tpu.core_type = #tpu.core_type<tc>, window_params = [{pipeline_mode = #tpu.pipeline_mode<synchronous>, transform_indices = @transform_0, window_bounds = array<i64: 20, 1, 32>}, {pipeline_mode = #tpu.pipeline_mode<synchronous>, transform_indices = @transform_1, window_bounds = array<i64: 4, 32>}, {pipeline_mode = #tpu.pipeline_mode<synchronous>, transform_indices = @transform_2, window_bounds = array<i64: 20, 3, 32>}, {pipeline_mode = #tpu.pipeline_mode<synchronous>, transform_indices = @transform_3, window_bounds = array<i64: 20, 8, 32>}]} {
    %c0 = arith.constant 0 : index
    %c0_0 = arith.constant 0 : index
    %c0_1 = arith.constant 0 : index
    %0 = vector.load %arg1[%c0, %c0_0, %c0_1] : memref<20x1x32xf32, #tpu.memory_space<vmem>>, vector<20x1x32xf32>
    %c0_2 = arith.constant 0 : index
    %c0_3 = arith.constant 0 : index
    %c0_4 = arith.constant 0 : index
    %1 = vector.load %arg4[%c0_2, %c0_3, %c0_4] : memref<20x8x32xf32, #tpu.memory_space<vmem>>, vector<20x1x32xf32>
    tpu.vector_store %arg4[%c0_2, %c0_3, %c0_4], %0 {strides = array<i32>} : memref<20x8x32xf32, #tpu.memory_space<vmem>>, vector<20x1x32xf32>,
    %c0_5 = arith.constant 0 : index
    %c0_6 = arith.constant 0 : index
    %2 = vector.load %arg2[%c0_5, %c0_6] : memref<4x32xf32, #tpu.memory_space<vmem>>, vector<4x32xf32>
    %3 = vector.shape_cast %2 : vector<4x32xf32> to vector<1x4x32xf32>
    %4 = vector.shape_cast %3 : vector<1x4x32xf32> to vector<1x4x32xf32>
    %5 = vector.broadcast %4 : vector<1x4x32xf32> to vector<20x4x32xf32>
    %c0_7 = arith.constant 0 : index
    %c1 = arith.constant 1 : index
    %c0_8 = arith.constant 0 : index
    %6 = vector.load %arg4[%c0_7, %c1, %c0_8] : memref<20x8x32xf32, #tpu.memory_space<vmem>>, vector<20x4x32xf32>
    tpu.vector_store %arg4[%c0_7, %c1, %c0_8], %5 {strides = array<i32>} : memref<20x8x32xf32, #tpu.memory_space<vmem>>, vector<20x4x32xf32>,
    %c0_9 = arith.constant 0 : index
    %c0_10 = arith.constant 0 : index
    %c0_11 = arith.constant 0 : index
    %7 = vector.load %arg3[%c0_9, %c0_10, %c0_11] : memref<20x3x32xf32, #tpu.memory_space<vmem>>, vector<20x3x32xf32>
    %c0_12 = arith.constant 0 : index
    %c5 = arith.constant 5 : index
    %c0_13 = arith.constant 0 : index
    %8 = vector.load %arg4[%c0_12, %c5, %c0_13] : memref<20x8x32xf32, #tpu.memory_space<vmem>>, vector<20x3x32xf32>
    tpu.vector_store %arg4[%c0_12, %c5, %c0_13], %7 {strides = array<i32>} : memref<20x8x32xf32, #tpu.memory_space<vmem>>, vector<20x3x32xf32>,
    return
  }
  func.func @transform_0(%arg0: i32) -> (i32, i32, i32) {
    %c0_i32 = arith.constant 0 : i32
    %c0_i32_0 = arith.constant 0 : i32
    %c0_i32_1 = arith.constant 0 : i32
    %c0_i32_2 = arith.constant 0 : i32
    return %c0_i32, %c0_i32_0, %c0_i32_1 : i32, i32, i32
  }
  func.func @transform_1(%arg0: i32) -> (i32, i32) {
    %c0_i32 = arith.constant 0 : i32
    %c0_i32_0 = arith.constant 0 : i32
    %c0_i32_1 = arith.constant 0 : i32
    return %c0_i32, %c0_i32_0 : i32, i32
  }
  func.func @transform_2(%arg0: i32) -> (i32, i32, i32) {
    %c0_i32 = arith.constant 0 : i32
    %c0_i32_0 = arith.constant 0 : i32
    %c0_i32_1 = arith.constant 0 : i32
    %c0_i32_2 = arith.constant 0 : i32
    return %c0_i32, %c0_i32_0, %c0_i32_1 : i32, i32, i32
  }
  func.func @transform_3(%arg0: i32) -> (i32, i32, i32) {
    %c0_i32 = arith.constant 0 : i32
    %c0_i32_0 = arith.constant 0 : i32
    %c0_i32_1 = arith.constant 0 : i32
    %c0_i32_2 = arith.constant 0 : i32
    return %c0_i32, %c0_i32_0, %c0_i32_1 : i32, i32, i32
  }
}

</mosaic_0001>

<bundles_post_ra>
// kernel: tpu_custom_call.1
= control target key start
LH: loop header
LB: loop body
LE: loop exit
PB: predicated region body
PF: predicated region fallthrough
CT: control target
= control target key end

     0   :  { %vm35_vm0 = vcmask 253952   ;;  %vm57_vm1 = vcmask 257024   ;;  %vm98_vm2 = vcmask 256000   ;;  %s380_s0 = inlined_call_operand.vmem [shape: f32[20,1,32], index: 0, kind: input, shape index: {}]   ;;  %s381_s1 = inlined_call_operand.vmem [shape: f32[4,32], index: 1, kind: input, shape index: {}]   ;;  %s382_s2 = inlined_call_operand.vmem [shape: f32[20,3,32], index: 2, kind: input, shape index: {}]   ;;  %s383_s3 = inlined_call_operand.hbm [shape: f32[20,8,32], index: 3, kind: output, shape index: {}]  }
   0x1   :  { %v15_v0 = vld [vmem:[%s380_s0] sm:$0x1]  ;;  %v16_v1 = vld [vmem:[%s380_s0 + $0x1] sm:$0x1]  ;;  %v17_v2 = vld [vmem:[%s380_s0 + $0x2] sm:$0x1] }
   0x2   :  { %36 = vst.msk [vmem:[#allocation2] sm:$0x1] %vm35_vm0, %v15_v0  ;;  %37 = vst.msk [vmem:[#allocation2 + $0x8] sm:$0x1] %vm35_vm0, %v16_v1  ;;  %v18_v3 = vld [vmem:[%s380_s0 + $0x3] sm:$0x1] }
   0x3   :  { %v19_v4 = vld [vmem:[%s380_s0 + $0x4] sm:$0x1]  ;;  %38 = vst.msk [vmem:[#allocation2 + $0x10] sm:$0x1] %vm35_vm0, %v17_v2  ;;  %39 = vst.msk [vmem:[#allocation2 + $0x18] sm:$0x1] %vm35_vm0, %v18_v3 }
   0x4   :  { %40 = vst.msk [vmem:[#allocation2 + $0x20] sm:$0x1] %vm35_vm0, %v19_v4  ;;  %v20_v5 = vld [vmem:[%s380_s0 + $0x5] sm:$0x1]  ;;  %v21_v6 = vld [vmem:[%s380_s0 + $0x6] sm:$0x1] }
   0x5   :  { %v22_v7 = vld [vmem:[%s380_s0 + $0x7] sm:$0x1]  ;;  %41 = vst.msk [vmem:[#allocation2 + $0x28] sm:$0x1] %vm35_vm0, %v20_v5  ;;  %42 = vst.msk [vmem:[#allocation2 + $0x30] sm:$0x1] %vm35_vm0, %v21_v6 }
   0x6   :  { %43 = vst.msk [vmem:[#allocation2 + $0x38] sm:$0x1] %vm35_vm0, %v22_v7  ;;  %v23_v8 = vld [vmem:[%s380_s0 + $0x8] sm:$0x1]  ;;  %v24_v9 = vld [vmem:[%s380_s0 + $0x9] sm:$0x1] }
   0x7   :  { %v25_v10 = vld [vmem:[%s380_s0 + $0xa] sm:$0x1]  ;;  %44 = vst.msk [vmem:[#allocation2 + $0x40] sm:$0x1] %vm35_vm0, %v23_v8  ;;  %45 = vst.msk [vmem:[#allocation2 + $0x48] sm:$0x1] %vm35_vm0, %v24_v9 }
   0x8   :  { %46 = vst.msk [vmem:[#allocation2 + $0x50] sm:$0x1] %vm35_vm0, %v25_v10  ;;  %v26_v11 = vld [vmem:[%s380_s0 + $0xb] sm:$0x1]  ;;  %v27_v12 = vld [vmem:[%s380_s0 + $0xc] sm:$0x1] }
   0x9   :  { %v28_v13 = vld [vmem:[%s380_s0 + $0xd] sm:$0x1]  ;;  %47 = vst.msk [vmem:[#allocation2 + $0x58] sm:$0x1] %vm35_vm0, %v26_v11  ;;  %48 = vst.msk [vmem:[#allocation2 + $0x60] sm:$0x1] %vm35_vm0, %v27_v12 }
   0xa   :  { %49 = vst.msk [vmem:[#allocation2 + $0x68] sm:$0x1] %vm35_vm0, %v28_v13  ;;  %v29_v14 = vld [vmem:[%s380_s0 + $0xe] sm:$0x1]  ;;  %v30_v15 = vld [vmem:[%s380_s0 + $0xf] sm:$0x1] }
   0xb   :  { %v31_v16 = vld [vmem:[%s380_s0 + $0x10] sm:$0x1]  ;;  %50 = vst.msk [vmem:[#allocation2 + $0x70] sm:$0x1] %vm35_vm0, %v29_v14  ;;  %51 = vst.msk [vmem:[#allocation2 + $0x78] sm:$0x1] %vm35_vm0, %v30_v15 }
   0xc   :  { %52 = vst.msk [vmem:[#allocation2 + $0x80] sm:$0x1] %vm35_vm0, %v31_v16  ;;  %v32_v17 = vld [vmem:[%s380_s0 + $0x11] sm:$0x1]  ;;  %v33_v18 = vld [vmem:[%s380_s0 + $0x12] sm:$0x1] }
   0xd   :  { %v34_v19 = vld [vmem:[%s380_s0 + $0x13] sm:$0x1]  ;;  %53 = vst.msk [vmem:[#allocation2 + $0x88] sm:$0x1] %vm35_vm0, %v32_v17  ;;  %54 = vst.msk [vmem:[#allocation2 + $0x90] sm:$0x1] %vm35_vm0, %v33_v18 }
   0xe   :  { %55 = vst.msk [vmem:[#allocation2 + $0x98] sm:$0x1] %vm35_vm0, %v34_v19  ;;  %v56_v20 = vld [vmem:[%s381_s1] sm:$0xf]  ;;  %v79_v22 = vld [vmem:[%s382_s2 + $0x4] sm:$0x7] }
   0xf   :  { %v78_v21 = vld [vmem:[%s382_s2] sm:$0x7]  ;;  %58 = vst.msk [vmem:[#allocation2 + $0x1] sm:$0xf] %vm57_vm1, %v56_v20  ;;  %59 = vst.msk [vmem:[#allocation2 + $0x9] sm:$0xf] %vm57_vm1, %v56_v20 }
  0x10   :  { %60 = vst.msk [vmem:[#allocation2 + $0x11] sm:$0xf] %vm57_vm1, %v56_v20  ;;  %61 = vst.msk [vmem:[#allocation2 + $0x19] sm:$0xf] %vm57_vm1, %v56_v20  ;;  %v80_v23 = vld [vmem:[%s382_s2 + $0x8] sm:$0x7] }
  0x11   :  { %62 = vst.msk [vmem:[#allocation2 + $0x21] sm:$0xf] %vm57_vm1, %v56_v20  ;;  %63 = vst.msk [vmem:[#allocation2 + $0x29] sm:$0xf] %vm57_vm1, %v56_v20  ;;  %v81_v24 = vld [vmem:[%s382_s2 + $0xc] sm:$0x7] }
  0x12   :  { %64 = vst.msk [vmem:[#allocation2 + $0x31] sm:$0xf] %vm57_vm1, %v56_v20  ;;  %65 = vst.msk [vmem:[#allocation2 + $0x39] sm:$0xf] %vm57_vm1, %v56_v20  ;;  %v82_v25 = vld [vmem:[%s382_s2 + $0x10] sm:$0x7] }
  0x13   :  { %66 = vst.msk [vmem:[#allocation2 + $0x41] sm:$0xf] %vm57_vm1, %v56_v20  ;;  %67 = vst.msk [vmem:[#allocation2 + $0x49] sm:$0xf] %vm57_vm1, %v56_v20  ;;  %v83_v26 = vld [vmem:[%s382_s2 + $0x14] sm:$0x7] }
  0x14   :  { %68 = vst.msk [vmem:[#allocation2 + $0x51] sm:$0xf] %vm57_vm1, %v56_v20  ;;  %69 = vst.msk [vmem:[#allocation2 + $0x59] sm:$0xf] %vm57_vm1, %v56_v20  ;;  %v84_v27 = vld [vmem:[%s382_s2 + $0x18] sm:$0x7] }
  0x15   :  { %70 = vst.msk [vmem:[#allocation2 + $0x61] sm:$0xf] %vm57_vm1, %v56_v20  ;;  %71 = vst.msk [vmem:[#allocation2 + $0x69] sm:$0xf] %vm57_vm1, %v56_v20  ;;  %v85_v28 = vld [vmem:[%s382_s2 + $0x1c] sm:$0x7] }
  0x16   :  { %72 = vst.msk [vmem:[#allocation2 + $0x71] sm:$0xf] %vm57_vm1, %v56_v20  ;;  %73 = vst.msk [vmem:[#allocation2 + $0x79] sm:$0xf] %vm57_vm1, %v56_v20  ;;  %v86_v29 = vld [vmem:[%s382_s2 + $0x20] sm:$0x7] }
  0x17   :  { %74 = vst.msk [vmem:[#allocation2 + $0x81] sm:$0xf] %vm57_vm1, %v56_v20  ;;  %75 = vst.msk [vmem:[#allocation2 + $0x89] sm:$0xf] %vm57_vm1, %v56_v20  ;;  %v87_v30 = vld [vmem:[%s382_s2 + $0x24] sm:$0x7] }
  0x18   :  { %76 = vst.msk [vmem:[#allocation2 + $0x91] sm:$0xf] %vm57_vm1, %v56_v20  ;;  %77 = vst.msk [vmem:[#allocation2 + $0x99] sm:$0xf] %vm57_vm1, %v56_v20  ;;  %v88_v31 = vld [vmem:[%s382_s2 + $0x28] sm:$0x7] }
  0x19   :  { %99 = vst.msk [vmem:[#allocation2 + $0x5] sm:$0x7] %vm98_vm2, %v78_v21  ;;  %100 = vst.msk [vmem:[#allocation2 + $0xd] sm:$0x7] %vm98_vm2, %v79_v22  ;;  %v89_v32 = vld [vmem:[%s382_s2 + $0x2c] sm:$0x7] }
  0x1a   :  { %101 = vst.msk [vmem:[#allocation2 + $0x15] sm:$0x7] %vm98_vm2, %v80_v23  ;;  %102 = vst.msk [vmem:[#allocation2 + $0x1d] sm:$0x7] %vm98_vm2, %v81_v24  ;;  %v90_v33 = vld [vmem:[%s382_s2 + $0x30] sm:$0x7] }
  0x1b   :  { %103 = vst.msk [vmem:[#allocation2 + $0x25] sm:$0x7] %vm98_vm2, %v82_v25  ;;  %104 = vst.msk [vmem:[#allocation2 + $0x2d] sm:$0x7] %vm98_vm2, %v83_v26  ;;  %v91_v34 = vld [vmem:[%s382_s2 + $0x34] sm:$0x7] }
  0x1c   :  { %105 = vst.msk [vmem:[#allocation2 + $0x35] sm:$0x7] %vm98_vm2, %v84_v27  ;;  %106 = vst.msk [vmem:[#allocation2 + $0x3d] sm:$0x7] %vm98_vm2, %v85_v28  ;;  %v92_v35 = vld [vmem:[%s382_s2 + $0x38] sm:$0x7] }
  0x1d   :  { %107 = vst.msk [vmem:[#allocation2 + $0x45] sm:$0x7] %vm98_vm2, %v86_v29  ;;  %108 = vst.msk [vmem:[#allocation2 + $0x4d] sm:$0x7] %vm98_vm2, %v87_v30  ;;  %v93_v36 = vld [vmem:[%s382_s2 + $0x3c] sm:$0x7] }
  0x1e   :  { %109 = vst.msk [vmem:[#allocation2 + $0x55] sm:$0x7] %vm98_vm2, %v88_v31  ;;  %110 = vst.msk [vmem:[#allocation2 + $0x5d] sm:$0x7] %vm98_vm2, %v89_v32  ;;  %v94_v37 = vld [vmem:[%s382_s2 + $0x40] sm:$0x7] }
  0x1f   :  { %111 = vst.msk [vmem:[#allocation2 + $0x65] sm:$0x7] %vm98_vm2, %v90_v33  ;;  %112 = vst.msk [vmem:[#allocation2 + $0x6d] sm:$0x7] %vm98_vm2, %v91_v34  ;;  %v95_v38 = vld [vmem:[%s382_s2 + $0x44] sm:$0x7] }
  0x20   :  { %113 = vst.msk [vmem:[#allocation2 + $0x75] sm:$0x7] %vm98_vm2, %v92_v35  ;;  %114 = vst.msk [vmem:[#allocation2 + $0x7d] sm:$0x7] %vm98_vm2, %v93_v36  ;;  %v96_v39 = vld [vmem:[%s382_s2 + $0x48] sm:$0x7] }
  0x21   :  { %115 = vst.msk [vmem:[#allocation2 + $0x85] sm:$0x7] %vm98_vm2, %v94_v37  ;;  %116 = vst.msk [vmem:[#allocation2 + $0x8d] sm:$0x7] %vm98_vm2, %v95_v38  ;;  %v97_v40 = vld [vmem:[%s382_s2 + $0x4c] sm:$0x7] }
  0x22   :  { %117 = vst.msk [vmem:[#allocation2 + $0x95] sm:$0x7] %vm98_vm2, %v96_v39 }
  0x23   :  { %8 = vsyncpa [#allocation3], 0  ;;  %s162_s9 = smov [#allocation2]   ;;  %118 = vst.msk [vmem:[#allocation2 + $0x9d] sm:$0x7] %vm98_vm2, %v97_v40 }
  0x24   :  { %s124_s10 = sshll.u32 %s162_s9, 4  ;;  %s125_s10 = int_to_ptr.vmem [resolvable:$true] %s124_s10 }
  0x25   :  { %s138_s11 = scalar_lea.vmem %s125_s10, 2560  ;;  %p143_p1 = scmp.lt.s32.totalorder %s125_s10, %s125_s10 }
  0x26   :  { %p139_p0 = scmp.ne.s32.totalorder %s125_s10, %s138_s11  ;;  %p144_p2 = scmp.lt.s32.totalorder %s138_s11, %s138_s11 }
  0x28   :  { %p145_p3 = por %p144_p2, %p143_p1 }
  0x2a   :  { %p146_p4 = pnand %p145_p3, %p139_p0 }
  0x2c   :  { %149 = shalt.err (!%p146_p4)
}
  0x2d   :  { %s150_s14 = scalar_lea.hbm %s383_s3, 2560 }
  0x2e   :  { %p151_p5 = scmp.ne.s32.totalorder %s383_s3, %s150_s14  ;;  %p154_p6 = scmp.lt.u32.totalorder %s150_s14, %s383_s3 }
  0x30   :  { %p156_p7 = pnand %p154_p6, %p151_p5 }
  0x32   :  { %159 = shalt.err (!%p156_p7)
}
  0x33   :  { %s163_s18 = smov 128   ;;  %s164_s19 = smov 8  }
  0x34   :  { %130 = dma.vmem_to_hbm [thread:$0]  %s125_s10, 2560, %s383_s3, [#allocation3], %s163_s18, %s163_s18, %s164_s19  }
  0x35   :  { %160 = dma.done.wait [#allocation3], 2560  }
  0x36   :  { %161 = vsyncadd [#allocation3], 4294964736 }
  0x37   :  { %134 = vsyncpa [#allocation3], 1 }

</bundles_post_ra>
